<compile_context>
chip_gen: v7x
topology: tpu7x:2x2x1
jax: 0.10.0
libtpu: 0.0.40
codegen_flags: <defaults>
</compile_context>

<pallas_src>
import jax
import jax.numpy as jnp
from jax.experimental import pallas as pl
from jax.experimental.pallas import tpu as pltpu

_LANES = 128
_SUBLANES = 8
_GRANULE = _LANES * _SUBLANES  # 1024 elements


def _make_masked_l1_kernel(l_total, tl, needs_tail_mask):
    """Returns a kernel closed over static tiling parameters.

    Block shapes seen by the kernel:
      im1_ref, im2_ref : (1, C, TL)
      mask_ref         : (1, 1, TL)
      out_ref          : (1, 1, 2, 128)  row 0 = sum|(im1-im2)*mask|, row 1 = sum(mask)
    """

    def kernel(im1_ref, im2_ref, mask_ref, out_ref):
        # Upcast after load (free if already f32; halves HBM traffic for bf16 inputs).
        a = im1_ref[...].astype(jnp.float32)
        b = im2_ref[...].astype(jnp.float32)
        m = mask_ref[...].astype(jnp.float32)            # (1, 1, TL)

        # |(im1 - im2) * mask| == |im1*mask - im2*mask| (exact for 0/1 masks).
        diff = jnp.abs((a - b) * m)                      # (1, C, TL)

        if needs_tail_mask:
            # Ragged tail: zero out-of-bounds lanes of the last tile (OOB block
            # contents are undefined on TPU).
            j = pl.program_id(1)
            lane = jax.lax.broadcasted_iota(jnp.int32, m.shape, 2)  # (1, 1, TL)
            valid = (j * tl + lane) < l_total
            diff = jnp.where(valid, diff, 0.0)           # broadcast over C
            m = jnp.where(valid, m, 0.0)

        abs_sum = jnp.sum(diff)                          # cross-lane reduce (XLU)
        msk_sum = jnp.sum(m)

        # Single lane-dense output block: trailing block dims equal the full
        # trailing array dims -> one small store per grid step.
        row = jax.lax.broadcasted_iota(jnp.int32, out_ref.shape, 2)
        out_ref[...] = jnp.where(row == 0, abs_sum, msk_sum).astype(jnp.float32)

    return kernel


def _pick_flat_tile(c, l, budget_bytes=4 * 1024 * 1024):
    """Pick the flattened tile length TL.

    Budget accounts for sublane padding of the second-minor dim (C -> ceil(C/8)*8)
    so the *VMEM* footprint of one image block stays <= budget_bytes.
    """
    if l <= _GRANULE:
        return l  # full extent: always a legal block, single grid step per image
    padded_c = ((c + _SUBLANES - 1) // _SUBLANES) * _SUBLANES
    tl = (budget_bytes // (padded_c * 4)) // _GRANULE * _GRANULE
    tl = max(tl, _GRANULE)
    tl = min(tl, (l // _GRANULE) * _GRANULE)
    return tl


def l1_loss(im1, im2, mask, weight=1.0):
    """Pallas implementation of L1Loss.forward.

    im1, im2 : (N, C, H, W) float32 or bfloat16
    mask     : (N, 1, H, W) float32 or bfloat16
    weight   : static Python number (module attribute); weight == 0 short-circuits.
    """
    if weight == 0:  # static, mirrors the module's `if self.weight == 0`
        return jnp.float32(0.0)

    n, c, h, w = im1.shape
    l = h * w

    # Free row-major reinterpretation -> lane-dense last dim for any W.
    im1_f = im1.reshape(n, c, l)
    im2_f = im2.reshape(n, c, l)
    mask_f = mask.reshape(n, 1, l)

    tl = _pick_flat_tile(c, l)
    nt = pl.cdiv(l, tl)
    needs_tail_mask = (l % tl) != 0

    kernel = _make_masked_l1_kernel(l, tl, needs_tail_mask)

    parts = pl.pallas_call(
        kernel,
        out_shape=jax.ShapeDtypeStruct((n, nt, 2, _LANES), jnp.float32),
        grid_spec=pltpu.PrefetchScalarGridSpec(
            num_scalar_prefetch=0,
            grid=(n, nt),
            in_specs=[
                pl.BlockSpec((1, c, tl), lambda i, j: (i, 0, j)),
                pl.BlockSpec((1, c, tl), lambda i, j: (i, 0, j)),
                pl.BlockSpec((1, 1, tl), lambda i, j: (i, 0, j)),
            ],
            out_specs=pl.BlockSpec((1, 1, 2, _LANES), lambda i, j: (i, j, 0, 0)),
        ),
        compiler_params=pltpu.CompilerParams(
            # Each grid step writes its own output block (no accumulator), so both
            # axes can be sharded across TensorCores.
            dimension_semantics=("parallel", "parallel"),
            vmem_limit_bytes=48 * 1024 * 1024,
        ),
    )(im1_f, im2_f, mask_f)

    abs_total = jnp.sum(parts[:, :, 0, 0])   # sum |im1*mask - im2*mask|
    mask_total = jnp.sum(parts[:, :, 1, 0])  # mask.sum()

    l1_mean = abs_total / (n * c * h * w)    # F.l1_loss(..., reduction='mean')
    return l1_mean / mask_total * mask.size * weight


# ---------------- pure-JAX reference (mirrors torch semantics) ----------------
def l1_loss_ref(im1, im2, mask, weight=1.0):
    if weight == 0:
        return jnp.float32(0.0)
    l1 = jnp.mean(jnp.abs(im1 * mask - im2 * mask))
    return l1 / jnp.sum(mask) * mask.size * weight


if __name__ == "__main__":
    key = jax.random.PRNGKey(0)

    # --- case 1: spec-sized small input (no ragged tail) ---
    k1, k2, k3, k4, k5, k6 = jax.random.split(key, 6)
    N, C, H, W = 2, 3, 16, 16
    im1 = jax.random.uniform(k1, (N, C, H, W), jnp.float32)
    im2 = jax.random.uniform(k2, (N, C, H, W), jnp.float32)
    mask = (jax.random.uniform(k3, (N, 1, H, W)) > 0.2).astype(jnp.float32)
    weight = 1.0

    out = jax.block_until_ready(l1_loss(im1, im2, mask, weight))
    ref = l1_loss_ref(im1, im2, mask, weight)
    assert jnp.allclose(out, ref, rtol=1e-4, atol=1e-6), (out, ref)

    # --- case 2: exercises the cdiv grid + in-kernel tail masking path ---
    N2, C2, H2, W2 = 1, 3, 36, 40   # L = 1440 > 1024 and not a multiple of 1024
    im1b = jax.random.uniform(k4, (N2, C2, H2, W2), jnp.float32)
    im2b = jax.random.uniform(k5, (N2, C2, H2, W2), jnp.float32)
    maskb = (jax.random.uniform(k6, (N2, 1, H2, W2)) > 0.3).astype(jnp.float32)

    outb = jax.block_until_ready(l1_loss(im1b, im2b, maskb, 0.5))
    refb = l1_loss_ref(im1b, im2b, maskb, 0.5)
    assert jnp.allclose(outb, refb, rtol=1e-4, atol=1e-6), (outb, refb)

    print("KERNEL_OK")
</pallas_src>

<mosaic_0001>
module attributes {stable_mosaic.version = 11 : i64} {
  func.func @kernel(%arg0: i32, %arg1: i32, %arg2: memref<1x3x256xf32, #tpu.memory_space<vmem>>, %arg3: memref<1x3x256xf32, #tpu.memory_space<vmem>>, %arg4: memref<1x1x256xf32, #tpu.memory_space<vmem>>, %arg5: memref<1x1x2x128xf32, #tpu.memory_space<vmem>>) attributes {dimension_semantics = [#tpu.dimension_semantics<parallel>, #tpu.dimension_semantics<parallel>], iteration_bounds = array<i64: 2, 1>, scalar_prefetch = 0 : i64, scratch_operands = 0 : i64, tpu.core_type = #tpu.core_type<tc>, window_params = [{transform_indices = @transform_0, window_bounds = array<i64: 1, 3, 256>}, {transform_indices = @transform_1, window_bounds = array<i64: 1, 3, 256>}, {transform_indices = @transform_2, window_bounds = array<i64: 1, 1, 256>}, {transform_indices = @transform_3, window_bounds = array<i64: 1, 1, 2, 128>}]} {
    %c0 = arith.constant 0 : index
    %c0_0 = arith.constant 0 : index
    %c0_1 = arith.constant 0 : index
    %0 = vector.load %arg2[%c0, %c0_0, %c0_1] : memref<1x3x256xf32, #tpu.memory_space<vmem>>, vector<1x3x256xf32>
    %c0_2 = arith.constant 0 : index
    %c0_3 = arith.constant 0 : index
    %c0_4 = arith.constant 0 : index
    %1 = vector.load %arg3[%c0_2, %c0_3, %c0_4] : memref<1x3x256xf32, #tpu.memory_space<vmem>>, vector<1x3x256xf32>
    %c0_5 = arith.constant 0 : index
    %c0_6 = arith.constant 0 : index
    %c0_7 = arith.constant 0 : index
    %2 = vector.load %arg4[%c0_5, %c0_6, %c0_7] : memref<1x1x256xf32, #tpu.memory_space<vmem>>, vector<1x1x256xf32>
    %3 = arith.subf %0, %1 : vector<1x3x256xf32>
    %4 = vector.broadcast %2 : vector<1x1x256xf32> to vector<1x3x256xf32>
    %5 = arith.mulf %3, %4 : vector<1x3x256xf32>
    %6 = math.absf %5 : vector<1x3x256xf32>
    %7 = vector.shape_cast %6 : vector<1x3x256xf32> to vector<1x1x3x256xf32>
    %cst = arith.constant dense<0.000000e+00> : vector<1xf32>
    %8 = vector.multi_reduction <add>, %7, %cst [1, 2, 3] : vector<1x1x3x256xf32> to vector<1xf32>
    %9 = vector.shape_cast %8 : vector<1xf32> to vector<1x1x1x1xf32>
    %10 = vector.extract %9[0, 0, 0, 0] : f32 from vector<1x1x1x1xf32>
    %11 = vector.shape_cast %2 : vector<1x1x256xf32> to vector<1x1x1x256xf32>
    %cst_8 = arith.constant dense<0.000000e+00> : vector<1xf32>
    %12 = vector.multi_reduction <add>, %11, %cst_8 [1, 2, 3] : vector<1x1x1x256xf32> to vector<1xf32>
    %13 = vector.shape_cast %12 : vector<1xf32> to vector<1x1x1x1xf32>
    %14 = vector.extract %13[0, 0, 0, 0] : f32 from vector<1x1x1x1xf32>
    %15 = tpu.iota {dimensions = array<i32: 2>} : vector<1x1x2x128xi32>
    %c0_i32 = arith.constant 0 : i32
    %16 = vector.broadcast %c0_i32 : i32 to vector<1x1x2x128xi32>
    %17 = arith.cmpi eq, %15, %16 : vector<1x1x2x128xi32>
    %18 = vector.broadcast %10 : f32 to vector<1x1x2x128xf32>
    %19 = vector.broadcast %14 : f32 to vector<1x1x2x128xf32>
    %20 = arith.select %17, %18, %19 : vector<1x1x2x128xi1>, vector<1x1x2x128xf32>
    %c0_9 = arith.constant 0 : index
    %c0_10 = arith.constant 0 : index
    %c0_11 = arith.constant 0 : index
    %c0_12 = arith.constant 0 : index
    %21 = vector.load %arg5[%c0_9, %c0_10, %c0_11, %c0_12] : memref<1x1x2x128xf32, #tpu.memory_space<vmem>>, vector<1x1x2x128xf32>
    tpu.vector_store %arg5[%c0_9, %c0_10, %c0_11, %c0_12], %20 {strides = array<i32>} : memref<1x1x2x128xf32, #tpu.memory_space<vmem>>, vector<1x1x2x128xf32>,
    return
  }
  func.func @transform_0(%arg0: i32, %arg1: i32) -> (i32, i32, i32) {
    %c0_i32 = arith.constant 0 : i32
    %c0_i32_0 = arith.constant 0 : i32
    return %arg0, %c0_i32, %arg1 : i32, i32, i32
  }
  func.func @transform_1(%arg0: i32, %arg1: i32) -> (i32, i32, i32) {
    %c0_i32 = arith.constant 0 : i32
    %c0_i32_0 = arith.constant 0 : i32
    return %arg0, %c0_i32, %arg1 : i32, i32, i32
  }
  func.func @transform_2(%arg0: i32, %arg1: i32) -> (i32, i32, i32) {
    %c0_i32 = arith.constant 0 : i32
    %c0_i32_0 = arith.constant 0 : i32
    return %arg0, %c0_i32, %arg1 : i32, i32, i32
  }
  func.func @transform_3(%arg0: i32, %arg1: i32) -> (i32, i32, i32, i32) {
    %c0_i32 = arith.constant 0 : i32
    %c0_i32_0 = arith.constant 0 : i32
    %c0_i32_1 = arith.constant 0 : i32
    return %arg0, %arg1, %c0_i32, %c0_i32_0 : i32, i32, i32, i32
  }
}

</mosaic_0001>

<bundles_post_ra>
// kernel: tpu_custom_call.1
= control target key start
LH: loop header
LB: loop body
LE: loop exit
PB: predicated region body
PF: predicated region fallthrough
CT: control target
= control target key end

     0   :  { %8 = vsyncpa [#allocation3], 0  ;;  %s740_s0 = inlined_call_operand.vmem [shape: f32[2,3,256], index: 0, kind: input, shape index: {}]   ;;  %s741_s1 = inlined_call_operand.vmem [shape: f32[2,3,256], index: 1, kind: input, shape index: {}]   ;;  %s742_s2 = inlined_call_operand.vmem [shape: f32[2,1,256], index: 2, kind: input, shape index: {}]   ;;  %s743_s3 = inlined_call_operand.hbm [shape: f32[2,1,2,128], index: 3, kind: output, shape index: {}]  }
   0x1   :  { %10 = vsyncpa [#allocation3 + $0x1], 0  ;;  %s622_s12 = smov 0   ;;  %s624_s13 = smov 0  }
   0x2   :  { %s626_s14 = smov 0   ;;  %s628_s15 = smov 0  }
   0x3   :  { %s630_s16 = smov 0   ;;  %s632_s17 = smov 0  }
   0x4 LB: > { %s445_s18 = sadd.s32 4294967295, %s599_s17   ;;  %s446_s19 = sadd.s32 4294967294, %s599_s17   ;;  %s599_s17 = sphi %s632_s17, %s16_s17   ;;  %s595_s16 = sphi %s630_s16, %s750_s16   ;;  %s591_s15 = sphi %s628_s15, %s749_s15   ;;  %s587_s14 = sphi %s626_s14, %s748_s14   ;;  %s583_s13 = sphi %s624_s13, %s747_s13   ;;  %s579_s12 = sphi %s622_s12, %s746_s12  }
   0x5   : > { %s28_s20 = sadd.s32 1, %s595_s16  ;;  %s121_s21 = sadd.s32 1, %s587_s14 }
   0x6   : > { %p30_p0 = scmp.ge.s32.totalorder %s28_s20, 2  ;;  %p131_p1 = scmp.ne.s32.totalorder %s587_s14, %s583_s13 }
   0x7   : > { %p132_p2 = scmp.eq.s32.totalorder %s445_s18, 1  ;;  %p137_p3 = scmp.ne.s32.totalorder %s583_s13, %s579_s12 }
   0x8   : > { %s752_s20 = smov (%p30_p0, %s28_s20), 0  ;;  %p138_p5 = scmp.eq.s32.totalorder %s446_s19, 1 }
   0x9   : > { %p662_p4 = por %p132_p2, %p131_p1  ;;  %s116_s23 = ssub.s32 %s595_s16, %s752_s20 }
   0xa   : > { %p449_p6 = scmp.ge.s32.totalorder %s599_s17, 1  ;;  %p119_p7 = scmp.eq.s32.totalorder %s116_s23, 0 }
   0xb   : > { %p669_p8 = por %p138_p5, %p137_p3  ;;  %p194_p9 = scmp.lt.s32.totalorder %s599_s17, 3 }
   0xc   : > { %s675_s25 = scalar_select %p119_p7, %s587_s14, %s121_s21  }
   0xd   : > { %p195_p10 = pnand %p449_p6, %p194_p9 }
   0xe   : > { %p240_p11 = scmp.lt.s32.totalorder (!%p195_p10), %s591_s15, 1  ;;  %v273_v0 = vlaneseq (!%p195_p10)  ;;  %vm288_vm0 = vcmask (!%p195_p10), 1042432   ;;  %vm303_vm1 = vcmask (!%p195_p10), 1040384   ;;  %s236_s11 = sand.u32 (!%p195_p10), 1, %s583_s13  }
   0xf   : > { %198 = sbr.rel (%p195_p10) target bundleno = 266 (0x10a), region = 32  ;;  %s450_s18 = sshll.u32 (!%p195_p10), %s236_s11, 1 }
  0x10   : > { %v274_v1 = vshrl.u32 (!%p195_p10), %v273_v0, 7  ;;  %s457_s19 = sshll.u32 (!%p195_p10), %s591_s15, 5  ;;  %s238_s23 = scalar_lea.vmem (!%p195_p10), [#allocation2], %s450_s18 }
  0x11   : > { %s693_s30 = scalar_lea.hbm (!%p195_p10), %s743_s3, %s457_s19  ;;  %s601_s5 = smov (!%p195_p10), [#allocation2]  }
  0x12   : > { %v275_v2 = vsub.s32 (!%p195_p10), 0, %v274_v1  ;;  %v279_v3 = vsub.s32 (!%p195_p10), 1, %v274_v1  ;;  %vm318_vm2 = vcmp.eq.s32.totalorder (!%p195_p10), %v274_v1, 0  ;;  %s525_s6 = sshll.u32 (!%p195_p10), %s601_s5, 4  ;;  %s526_s6 = int_to_ptr.vmem [resolvable:$false] %s525_s6 }
  0x16   : > { %s241_s26 = scalar_select %p240_p11, %s591_s15, 1 }
  0x17   : > { %s324_s15 = scalar_lea.sflag [#allocation3], %s236_s11 }
  0x18   : > { %s460_s27 = sshll.u32 %s241_s26, 3  ;;  %s455_s28 = sshll.u32 %s241_s26, 1 }
  0x19   : > { %s247_s4 = scalar_lea.vmem %s740_s0, %s460_s27  ;;  %s257_s7 = scalar_lea.vmem %s741_s1, %s460_s27 }
  0x1a   : > { %s266_s10 = scalar_lea.vmem %s742_s2, %s455_s28  ;;  %v268_v4 = vld [vmem:[%s247_s4] sm:$0x77]  ;;  %s338_s26 = sshll.u32 %s238_s23, 4  ;;  %s695_s26 = int_to_ptr.vmem [resolvable:$true] %s338_s26 }
  0x1b   : > { %v269_v5 = vld [vmem:[%s257_s7] sm:$0x77]  ;;  %s521_s4 = scalar_lea.vmem %s695_s26, 32  ;;  %s527_s7 = scalar_lea.vmem %s526_s6, 64 }
  0x1c   : > { %v270_v6 = vld [vmem:[%s266_s10] sm:$0x3]  ;;  %v271_v7 = vsub.f32 %v268_v4, %v269_v5  ;;  %p522_p12 = scmp.ne.s32.totalorder %s695_s26, %s521_s4  ;;  %p528_p1 = scmp.lt.s32.totalorder %s695_s26, %s526_s6 }
  0x1d   : > { %v276_v8 = vrot.slane %v270_v6, %v275_v2  ;;  %v280_v9 = vrot.slane %v270_v6, %v279_v3  ;;  %p529_p2 = scmp.lt.s32.totalorder %s527_s7, %s521_s4 }
  0x1e   : > { %p523_p13 = pnand %p522_p12, %p662_p4 }
  0x1f   : > { %v281_v10 = vcombine.low %v276_v8, %v280_v9  ;;  %v304_v16 = vsel %vm303_vm1, %v276_v8, 0.0  ;;  %v305_v17 = vsel %vm303_vm1, %v280_v9, 0.0  ;;  %p530_p3 = por %p529_p2, %p528_p1 }
  0x20   : > { %v306_v19 = vadd.f32 %v305_v17, %v304_v16  ;;  %p524_p0 = pneg %p523_p13 }
  0x21   : > { %v283_v11 = vmul.f32 %v281_v10, %v271_v7 }
  0x22   : > { %p531_p5 = pnand %p530_p3, %p524_p0 }
  0x23   : > { %v284_v12 = vand.u32 2147483647, %v283_v11 }
  0x25   : > { %v286_v13 = vcombine.high %v284_v12, %v284_v12  ;;  %v289_v14 = vsel %vm288_vm0, %v284_v12, 0.0 }
  0x27   : > { %v290_v15 = vsel %vm288_vm0, %v286_v13, 0.0 }
  0x28   : > { %v291_v18 = vadd.f32 %v290_v15, %v289_v14 }
  0x2a   : > { %292 = vadd.xlane.f32.xlu0 %v291_v18 }
  0x2e   : > { %307 = vadd.xlane.f32.xlu0 %v306_v19 }
  0xb7   : > { %v293_v20 = vpop.xlane.xlu0 %292 }
  0xb8   : > { %v294_v21 = vrot.slane %v293_v20, 4 }
  0xba   : > { %v295_v22 = vadd.f32 %v294_v21, %v293_v20 }
  0xbb   : > { %v308_v23 = vpop.xlane.xlu0 %307 }
  0xbc   : > { %v296_v24 = vrot.slane %v295_v22, 2  ;;  %v309_v25 = vrot.slane %v308_v23, 4 }
  0xbe   : > { %v310_v26 = vadd.f32 %v309_v25, %v308_v23  ;;  %v297_v27 = vadd.f32 %v296_v24, %v295_v22 }
  0xc0   : > { %v311_v28 = vrot.slane %v310_v26, 2  ;;  %v298_v29 = vrot.slane %v297_v27, 1 }
  0xc2   : > { %v312_v30 = vadd.f32 %v311_v28, %v310_v26  ;;  %v299_v31 = vadd.f32 %v298_v29, %v297_v27 }
  0xc4   : > { %462 = vpush %v299_v31  ;;  %v313_v32 = vrot.slane %v312_v30, 1 }
  0xc6   : > { %v314_v33 = vadd.f32 %v313_v32, %v312_v30 }
  0xc8   : > { %464 = vpush %v314_v33 }
  0xf5   : > { %s463_s21 = spop %462 }
  0xf6   : > { %v319_v34 = vstv %s463_s21 }
  0xf9   : > { %s465_s27 = spop %464 }
  0xfa   : > { %v320_v35 = vstv %s465_s27 }
  0xfb   : > { %v321_v36 = vsel %vm318_vm2, %v319_v34, %v320_v35 }
  0xfc   : > { %322 = vst [vmem:[%s238_s23] sm:$0x3] %v321_v36 }
  0xfd   : > { %534 = shalt.err (!%p531_p5)
}
  0xfe   : > { %s535_s8 = scalar_lea.hbm %s693_s30, 32  ;;  %s539_s11 = scalar_lea.hbm %s743_s3, 64 }
  0xff   : > { %p536_p6 = scmp.ne.s32.totalorder %s693_s30, %s535_s8  ;;  %p540_p10 = scmp.lt.u32.totalorder %s693_s30, %s743_s3 }
 0x100   : > { %p541_p11 = scmp.lt.u32.totalorder %s539_s11, %s535_s8  ;;  %p543_p13 = scmp.lt.u32.totalorder %s535_s8, %s693_s30 }
 0x101   : > { %p537_p7 = pnand %p536_p6, %p662_p4 }
 0x102   : > { %p542_p12 = por %p541_p11, %p540_p10 }
 0x103   : > { %p538_p9 = pneg %p537_p7 }
 0x104   : > { %p544_p0 = por %p543_p13, %p542_p12 }
 0x106   : > { %p545_p1 = pnand %p544_p0, %p538_p9 }
 0x108   : > { %548 = shalt.err (!%p545_p1)
}
 0x109   : > { %466 = dma.vmem_to_hbm [thread:$0]  (%p662_p4), %s695_s26, 32, %s693_s30, %s324_s15  }
 0x10a PF: > { %p472_p2 = scmp.ge.s32.totalorder %s599_s17, 2  ;;  %s350_s21 = sand.u32 1, %s579_s12  }
 0x10b   : > { %s351_s23 = scalar_lea.sflag [#allocation3], %s350_s21 }
 0x10c   : > { %p469_p3 = pnand %p472_p2, %p669_p8 }
 0x10e   : > { %574 = dma.done.wait (!%p469_p3), %s351_s23, 32  }
 0x10f   : > { %576 = vsyncadd (!%p469_p3), %s351_s23, 4294967264  ;;  %s16_s17 = sadd.s32 1, %s599_s17   ;;  %s746_s12 = smov %s583_s13 }
 0x110   : > { %p13_p5 = scmp.ge.s32.totalorder %s16_s17, 4   ;;  %s747_s13 = smov %s587_s14 }
 0x111   : > { %s748_s14 = smov %s675_s25  ;;  %s749_s15 = smov %s595_s16 }
 0x112   : > { %s750_s16 = smov %s752_s20  ;;  %15 = sbr.rel (!%p13_p5) target bundleno = 4 (0x4), region = 73 }
 0x119   :  { %356 = vsyncpa [#allocation3], 1 }
 0x11a   :  { %358 = vsyncpa [#allocation3 + $0x1], 1 }

</bundles_post_ra>
